<compile_context>
chip_gen: v5e
topology: v5e:2x2
jax: 0.10.0
libtpu: 0.0.40
codegen_flags: <defaults>
</compile_context>

<pallas_src>
import functools

import numpy as np
import jax
import jax.numpy as jnp
from jax import lax
from jax.experimental import pallas as pl
from jax.experimental.pallas import tpu as pltpu


def _soft_dice_sums_kernel(x_ref, y_ref, tp_ref, sx_ref, cnt_ref, *,
                           num_classes, rows_total, tile_rows, acc_rows,
                           has_tail):
    """Accumulate per-(batch, class) spatial sums for one (b, spatial-tile).

    x_ref:   (1, C, tile_rows, 128) float  -- predictions (native dtype)
    y_ref:   (1, 1, tile_rows, 128) int    -- label map (narrow dtype ok)
    tp_ref:  (1, C, acc_rows, 128) f32 resident accumulator (sum x*onehot)
    sx_ref:  (1, C, acc_rows, 128) f32 resident accumulator (sum x)
    cnt_ref: (1, C, acc_rows, 128) f32 resident accumulator (sum onehot)
    """
    t = pl.program_id(1)
    fold = tile_rows // acc_rows

    @pl.when(t == 0)
    def _init():
        tp_ref[...] = jnp.zeros_like(tp_ref)
        sx_ref[...] = jnp.zeros_like(sx_ref)
        cnt_ref[...] = jnp.zeros_like(cnt_ref)

    # Labels: widen the narrow HBM/VMEM stream in-kernel (cheap VPU cast).
    y = y_ref[0, 0].astype(jnp.int32)                     # (tile_rows, 128)

    def fold_sum(a):
        # (tile_rows, 128) -> (acc_rows, 128); pure vreg adds (VALU), f32 acc.
        if fold == 1:
            return a.astype(jnp.float32)
        return jnp.sum(a.reshape(fold, acc_rows, 128), axis=0,
                       dtype=jnp.float32)

    def accumulate(valid):
        # Short unrolled per-class loop on fully lane/sublane-dense vregs.
        for c in range(num_classes):
            xc = x_ref[0, c]                              # (tile_rows, 128)
            sel = y == c
            if valid is not None:
                sel = jnp.logical_and(sel, valid)         # kill garbage lanes
                xs = jnp.where(valid, xc, 0)              # only sum_x needs it
            else:
                xs = xc
            tp_ref[0, c] += fold_sum(jnp.where(sel, xc, 0))
            cnt_ref[0, c] += fold_sum(sel)
            sx_ref[0, c] += fold_sum(xs)

    if not has_tail:
        accumulate(None)
    else:
        is_tail = t == pl.num_programs(1) - 1

        @pl.when(jnp.logical_not(is_tail))
        def _hot():                       # hot tiles: no masking work at all
            accumulate(None)

        @pl.when(is_tail)
        def _tail():                      # last tile: row-level validity only
            row = lax.broadcasted_iota(jnp.int32, (tile_rows, 128), 0)
            valid = (t * tile_rows + row) < rows_total
            accumulate(valid)


def soft_dice_loss(x, y, loss_mask=None, apply_nonlin=None, batch_dice=False,
                   do_bg=True, smooth=1.0, square=False,
                   max_block_bytes=4 << 20):
    """Pallas implementation of SoftDiceLoss.forward.

    x: (B, C, *spatial) predictions; y: (B, *spatial) or (B, 1, *spatial)
    integer label map.
    """
    if apply_nonlin is not None:
        # TODO(synk): fuse a softmax/sigmoid nonlinearity into the kernel.
        raise NotImplementedError("apply_nonlin is not supported in-kernel")
    if loss_mask is not None or square:
        # TODO(synk): loss_mask and square=True paths are not implemented.
        raise NotImplementedError("loss_mask / square=True not supported")

    B, C = int(x.shape[0]), int(x.shape[1])
    HW = int(np.prod(x.shape[2:]))

    if y.ndim == x.ndim:
        if y.shape[1] == 1:
            y = y.reshape((B,) + tuple(y.shape[2:]))
        else:
            # TODO(synk): one-hot / soft ground-truth input not supported.
            raise NotImplementedError("pass a label map, not one-hot gt")
    if not jnp.issubdtype(y.dtype, jnp.integer):
        y = y.astype(jnp.int32)

    # Flat class-major pixel stream, split into (rows, 128) so every block is
    # lane- AND sublane-dense independent of C. Labels keep their narrow dtype.
    x3 = x.reshape(B, C, HW)
    y3 = y.reshape(B, 1, HW)
    pad = (-HW) % 128
    if pad:
        # Uncommon path (HW % 128 != 0): one extra HBM round trip to pad.
        # Padded labels use an out-of-range class and padded x is 0, so they
        # contribute nothing to tp / fn / fp.
        if C > np.iinfo(y3.dtype).max:
            y3 = y3.astype(jnp.int32)
        x3 = jnp.pad(x3, ((0, 0), (0, 0), (0, pad)))
        y3 = jnp.pad(y3, ((0, 0), (0, 0), (0, pad)), constant_values=C)
    R = (HW + pad) // 128
    x4 = x3.reshape(B, C, R, 128)
    y4 = y3.reshape(B, 1, R, 128)

    # Spatial tile: ~max_block_bytes per x block (>= the 85%-of-roofline
    # plateau for per-step overhead) while staying multiple-of-8 rows.
    x_item = jnp.dtype(x.dtype).itemsize
    y_item = jnp.dtype(y4.dtype).itemsize
    cap_rows = max(8, (max_block_bytes // (C * 128 * x_item)) // 8 * 8)
    if R <= 8:
        tile_rows = R                       # single full-extent tile
    else:
        tile_rows = min(cap_rows, (R // 8) * 8)
    acc_rows = min(tile_rows, 8)
    num_tiles = pl.cdiv(R, tile_rows)
    has_tail = (R % tile_rows) != 0

    # Explicit VMEM budget: double-buffered x & y blocks + resident f32
    # accumulator output blocks + headroom for Mosaic-internal scratch.
    x_block = C * tile_rows * 128 * x_item
    y_block = tile_rows * 128 * y_item
    acc_block = 3 * C * max(acc_rows, 8) * 128 * 4
    vmem_limit = int(min(2 * (x_block + y_block) + 2 * acc_block + (8 << 20),
                         100 << 20))

    kernel = functools.partial(
        _soft_dice_sums_kernel, num_classes=C, rows_total=R,
        tile_rows=tile_rows, acc_rows=acc_rows, has_tail=has_tail)

    acc_sds = jax.ShapeDtypeStruct((B, C, acc_rows, 128), jnp.float32)
    acc_spec = pl.BlockSpec((1, C, acc_rows, 128), lambda b, t: (b, 0, 0, 0))

    tp, sx, cnt = pl.pallas_call(
        kernel,
        out_shape=(acc_sds, acc_sds, acc_sds),
        grid_spec=pltpu.PrefetchScalarGridSpec(
            num_scalar_prefetch=0,
            grid=(B, num_tiles),
            in_specs=[
                pl.BlockSpec((1, C, tile_rows, 128), lambda b, t: (b, 0, t, 0)),
                pl.BlockSpec((1, 1, tile_rows, 128), lambda b, t: (b, 0, t, 0)),
            ],
            out_specs=(acc_spec, acc_spec, acc_spec),
        ),
        compiler_params=pltpu.CompilerParams(
            dimension_semantics=("parallel", "arbitrary"),
            vmem_limit_bytes=vmem_limit),
    )(x4, y4)

    # Tiny O(B*C*128) epilogue in plain JAX (matches the PyTorch reference).
    tp = tp.sum(axis=(2, 3))                 # (B, C)
    fp = sx.sum(axis=(2, 3)) - tp            # sum(x)      - tp
    fn = cnt.sum(axis=(2, 3)) - tp           # sum(onehot) - tp

    if batch_dice:
        tp, fp, fn = tp.sum(0), fp.sum(0), fn.sum(0)
    dc = (2.0 * tp + smooth) / (2.0 * tp + fp + fn + smooth)
    if not do_bg:
        dc = dc[1:] if batch_dice else dc[:, 1:]
    return -dc.mean()


def _reference_soft_dice(x, y, smooth=1.0):
    """Pure-JAX reference mirroring SoftDiceLoss defaults."""
    B, C, H, W = x.shape
    y_onehot = jax.nn.one_hot(y, C, axis=1, dtype=jnp.float32)   # (B, C, H, W)
    xf = x.astype(jnp.float32)
    tp = jnp.sum(xf * y_onehot, axis=(2, 3))
    fp = jnp.sum(xf * (1.0 - y_onehot), axis=(2, 3))
    fn = jnp.sum((1.0 - xf) * y_onehot, axis=(2, 3))
    dc = (2.0 * tp + smooth) / (2.0 * tp + fp + fn + smooth)
    return -dc.mean()


if __name__ == "__main__":
    key = jax.random.PRNGKey(0)
    k1, k2 = jax.random.split(key)

    B, C, H, W = 2, 4, 16, 16
    x = jax.random.normal(k1, (B, C, H, W), dtype=jnp.float32)
    # Narrow label dtype (int8) is streamed as-is through HBM by the kernel.
    y = jax.random.randint(k2, (B, H, W), 0, C, dtype=jnp.int32).astype(jnp.int8)

    loss = soft_dice_loss(x, y)
    loss = jax.block_until_ready(loss)

    ref = _reference_soft_dice(x, y)
    assert jnp.allclose(loss, ref, atol=1e-5, rtol=1e-5), (loss, ref)

    print("KERNEL_OK")
</pallas_src>

<mosaic_0001>
module attributes {stable_mosaic.version = 11 : i64} {
  func.func @_soft_dice_sums_kernel(%arg0: i32, %arg1: i32, %arg2: memref<1x4x2x128xf32, #tpu.memory_space<vmem>>, %arg3: memref<1x1x2x128xi8, #tpu.memory_space<vmem>>, %arg4: memref<1x4x2x128xf32, #tpu.memory_space<vmem>>, %arg5: memref<1x4x2x128xf32, #tpu.memory_space<vmem>>, %arg6: memref<1x4x2x128xf32, #tpu.memory_space<vmem>>) attributes {dimension_semantics = [#tpu.dimension_semantics<parallel>, #tpu.dimension_semantics<arbitrary>], iteration_bounds = array<i64: 2, 1>, scalar_prefetch = 0 : i64, scratch_operands = 0 : i64, tpu.core_type = #tpu.core_type<tc>, window_params = [{transform_indices = @transform_0, window_bounds = array<i64: 1, 4, 2, 128>}, {transform_indices = @transform_1, window_bounds = array<i64: 1, 1, 2, 128>}, {transform_indices = @transform_2, window_bounds = array<i64: 1, 4, 2, 128>}, {transform_indices = @transform_3, window_bounds = array<i64: 1, 4, 2, 128>}, {transform_indices = @transform_4, window_bounds = array<i64: 1, 4, 2, 128>}]} {
    %c0_i32 = arith.constant 0 : i32
    %0 = arith.cmpi eq, %arg1, %c0_i32 : i32
    %1 = arith.extui %0 : i1 to i32
    %c0_i32_0 = arith.constant 0 : i32
    %2 = arith.cmpi ne, %1, %c0_i32_0 : i32
    scf.if %2 {
      %cst = arith.constant 0.000000e+00 : f32
      %114 = vector.broadcast %cst : f32 to vector<1x4x2x128xf32>
      %c0_118 = arith.constant 0 : index
      %c0_119 = arith.constant 0 : index
      %c0_120 = arith.constant 0 : index
      %c0_121 = arith.constant 0 : index
      %115 = vector.load %arg4[%c0_118, %c0_119, %c0_120, %c0_121] : memref<1x4x2x128xf32, #tpu.memory_space<vmem>>, vector<1x4x2x128xf32>
      tpu.vector_store %arg4[%c0_118, %c0_119, %c0_120, %c0_121], %114 {strides = array<i32>} : memref<1x4x2x128xf32, #tpu.memory_space<vmem>>, vector<1x4x2x128xf32>,
      %cst_122 = arith.constant 0.000000e+00 : f32
      %116 = vector.broadcast %cst_122 : f32 to vector<1x4x2x128xf32>
      %c0_123 = arith.constant 0 : index
      %c0_124 = arith.constant 0 : index
      %c0_125 = arith.constant 0 : index
      %c0_126 = arith.constant 0 : index
      %117 = vector.load %arg5[%c0_123, %c0_124, %c0_125, %c0_126] : memref<1x4x2x128xf32, #tpu.memory_space<vmem>>, vector<1x4x2x128xf32>
      tpu.vector_store %arg5[%c0_123, %c0_124, %c0_125, %c0_126], %116 {strides = array<i32>} : memref<1x4x2x128xf32, #tpu.memory_space<vmem>>, vector<1x4x2x128xf32>,
      %cst_127 = arith.constant 0.000000e+00 : f32
      %118 = vector.broadcast %cst_127 : f32 to vector<1x4x2x128xf32>
      %c0_128 = arith.constant 0 : index
      %c0_129 = arith.constant 0 : index
      %c0_130 = arith.constant 0 : index
      %c0_131 = arith.constant 0 : index
      %119 = vector.load %arg6[%c0_128, %c0_129, %c0_130, %c0_131] : memref<1x4x2x128xf32, #tpu.memory_space<vmem>>, vector<1x4x2x128xf32>
      tpu.vector_store %arg6[%c0_128, %c0_129, %c0_130, %c0_131], %118 {strides = array<i32>} : memref<1x4x2x128xf32, #tpu.memory_space<vmem>>, vector<1x4x2x128xf32>,
    } else {
    }
    %c0 = arith.constant 0 : index
    %c0_1 = arith.constant 0 : index
    %c0_2 = arith.constant 0 : index
    %c0_3 = arith.constant 0 : index
    %3 = vector.load %arg3[%c0, %c0_1, %c0_2, %c0_3] : memref<1x1x2x128xi8, #tpu.memory_space<vmem>>, vector<1x1x2x128xi8>
    %4 = vector.shape_cast %3 : vector<1x1x2x128xi8> to vector<2x128xi8>
    %5 = arith.extsi %4 : vector<2x128xi8> to vector<2x128xi32>
    %c0_4 = arith.constant 0 : index
    %c0_5 = arith.constant 0 : index
    %c0_6 = arith.constant 0 : index
    %c0_7 = arith.constant 0 : index
    %6 = vector.load %arg2[%c0_4, %c0_5, %c0_6, %c0_7] : memref<1x4x2x128xf32, #tpu.memory_space<vmem>>, vector<1x1x2x128xf32>
    %7 = vector.shape_cast %6 : vector<1x1x2x128xf32> to vector<2x128xf32>
    %c0_i32_8 = arith.constant 0 : i32
    %8 = vector.broadcast %c0_i32_8 : i32 to vector<2x128xi32>
    %9 = arith.cmpi eq, %5, %8 : vector<2x128xi32>
    %c0_9 = arith.constant 0 : index
    %c0_10 = arith.constant 0 : index
    %c0_11 = arith.constant 0 : index
    %c0_12 = arith.constant 0 : index
    %10 = vector.load %arg4[%c0_9, %c0_10, %c0_11, %c0_12] : memref<1x4x2x128xf32, #tpu.memory_space<vmem>>, vector<1x1x2x128xf32>
    %11 = vector.shape_cast %10 : vector<1x1x2x128xf32> to vector<2x128xf32>
    %c0_i32_13 = arith.constant 0 : i32
    %12 = arith.sitofp %c0_i32_13 : i32 to f32
    %13 = vector.broadcast %12 : f32 to vector<2x128xf32>
    %14 = arith.select %9, %7, %13 : vector<2x128xi1>, vector<2x128xf32>
    %15 = arith.addf %11, %14 : vector<2x128xf32>
    %c0_14 = arith.constant 0 : index
    %c0_15 = arith.constant 0 : index
    %c0_16 = arith.constant 0 : index
    %c0_17 = arith.constant 0 : index
    %16 = vector.load %arg4[%c0_14, %c0_15, %c0_16, %c0_17] : memref<1x4x2x128xf32, #tpu.memory_space<vmem>>, vector<1x1x2x128xf32>
    %17 = vector.shape_cast %16 : vector<1x1x2x128xf32> to vector<2x128xf32>
    %18 = vector.shape_cast %15 : vector<2x128xf32> to vector<1x1x2x128xf32>
    tpu.vector_store %arg4[%c0_14, %c0_15, %c0_16, %c0_17], %18 {strides = array<i32>} : memref<1x4x2x128xf32, #tpu.memory_space<vmem>>, vector<1x1x2x128xf32>,
    %c0_18 = arith.constant 0 : index
    %c0_19 = arith.constant 0 : index
    %c0_20 = arith.constant 0 : index
    %c0_21 = arith.constant 0 : index
    %19 = vector.load %arg6[%c0_18, %c0_19, %c0_20, %c0_21] : memref<1x4x2x128xf32, #tpu.memory_space<vmem>>, vector<1x1x2x128xf32>
    %20 = vector.shape_cast %19 : vector<1x1x2x128xf32> to vector<2x128xf32>
    %21 = arith.extui %9 : vector<2x128xi1> to vector<2x128xi32>
    %22 = arith.sitofp %21 : vector<2x128xi32> to vector<2x128xf32>
    %23 = arith.addf %20, %22 : vector<2x128xf32>
    %c0_22 = arith.constant 0 : index
    %c0_23 = arith.constant 0 : index
    %c0_24 = arith.constant 0 : index
    %c0_25 = arith.constant 0 : index
    %24 = vector.load %arg6[%c0_22, %c0_23, %c0_24, %c0_25] : memref<1x4x2x128xf32, #tpu.memory_space<vmem>>, vector<1x1x2x128xf32>
    %25 = vector.shape_cast %24 : vector<1x1x2x128xf32> to vector<2x128xf32>
    %26 = vector.shape_cast %23 : vector<2x128xf32> to vector<1x1x2x128xf32>
    tpu.vector_store %arg6[%c0_22, %c0_23, %c0_24, %c0_25], %26 {strides = array<i32>} : memref<1x4x2x128xf32, #tpu.memory_space<vmem>>, vector<1x1x2x128xf32>,
    %c0_26 = arith.constant 0 : index
    %c0_27 = arith.constant 0 : index
    %c0_28 = arith.constant 0 : index
    %c0_29 = arith.constant 0 : index
    %27 = vector.load %arg5[%c0_26, %c0_27, %c0_28, %c0_29] : memref<1x4x2x128xf32, #tpu.memory_space<vmem>>, vector<1x1x2x128xf32>
    %28 = vector.shape_cast %27 : vector<1x1x2x128xf32> to vector<2x128xf32>
    %29 = arith.addf %28, %7 : vector<2x128xf32>
    %c0_30 = arith.constant 0 : index
    %c0_31 = arith.constant 0 : index
    %c0_32 = arith.constant 0 : index
    %c0_33 = arith.constant 0 : index
    %30 = vector.load %arg5[%c0_30, %c0_31, %c0_32, %c0_33] : memref<1x4x2x128xf32, #tpu.memory_space<vmem>>, vector<1x1x2x128xf32>
    %31 = vector.shape_cast %30 : vector<1x1x2x128xf32> to vector<2x128xf32>
    %32 = vector.shape_cast %29 : vector<2x128xf32> to vector<1x1x2x128xf32>
    tpu.vector_store %arg5[%c0_30, %c0_31, %c0_32, %c0_33], %32 {strides = array<i32>} : memref<1x4x2x128xf32, #tpu.memory_space<vmem>>, vector<1x1x2x128xf32>,
    %c0_34 = arith.constant 0 : index
    %c1 = arith.constant 1 : index
    %c0_35 = arith.constant 0 : index
    %c0_36 = arith.constant 0 : index
    %33 = vector.load %arg2[%c0_34, %c1, %c0_35, %c0_36] : memref<1x4x2x128xf32, #tpu.memory_space<vmem>>, vector<1x1x2x128xf32>
    %34 = vector.shape_cast %33 : vector<1x1x2x128xf32> to vector<2x128xf32>
    %c1_i32 = arith.constant 1 : i32
    %35 = vector.broadcast %c1_i32 : i32 to vector<2x128xi32>
    %36 = arith.cmpi eq, %5, %35 : vector<2x128xi32>
    %c0_37 = arith.constant 0 : index
    %c1_38 = arith.constant 1 : index
    %c0_39 = arith.constant 0 : index
    %c0_40 = arith.constant 0 : index
    %37 = vector.load %arg4[%c0_37, %c1_38, %c0_39, %c0_40] : memref<1x4x2x128xf32, #tpu.memory_space<vmem>>, vector<1x1x2x128xf32>
    %38 = vector.shape_cast %37 : vector<1x1x2x128xf32> to vector<2x128xf32>
    %c0_i32_41 = arith.constant 0 : i32
    %39 = arith.sitofp %c0_i32_41 : i32 to f32
    %40 = vector.broadcast %39 : f32 to vector<2x128xf32>
    %41 = arith.select %36, %34, %40 : vector<2x128xi1>, vector<2x128xf32>
    %42 = arith.addf %38, %41 : vector<2x128xf32>
    %c0_42 = arith.constant 0 : index
    %c1_43 = arith.constant 1 : index
    %c0_44 = arith.constant 0 : index
    %c0_45 = arith.constant 0 : index
    %43 = vector.load %arg4[%c0_42, %c1_43, %c0_44, %c0_45] : memref<1x4x2x128xf32, #tpu.memory_space<vmem>>, vector<1x1x2x128xf32>
    %44 = vector.shape_cast %43 : vector<1x1x2x128xf32> to vector<2x128xf32>
    %45 = vector.shape_cast %42 : vector<2x128xf32> to vector<1x1x2x128xf32>
    tpu.vector_store %arg4[%c0_42, %c1_43, %c0_44, %c0_45], %45 {strides = array<i32>} : memref<1x4x2x128xf32, #tpu.memory_space<vmem>>, vector<1x1x2x128xf32>,
    %c0_46 = arith.constant 0 : index
    %c1_47 = arith.constant 1 : index
    %c0_48 = arith.constant 0 : index
    %c0_49 = arith.constant 0 : index
    %46 = vector.load %arg6[%c0_46, %c1_47, %c0_48, %c0_49] : memref<1x4x2x128xf32, #tpu.memory_space<vmem>>, vector<1x1x2x128xf32>
    %47 = vector.shape_cast %46 : vector<1x1x2x128xf32> to vector<2x128xf32>
    %48 = arith.extui %36 : vector<2x128xi1> to vector<2x128xi32>
    %49 = arith.sitofp %48 : vector<2x128xi32> to vector<2x128xf32>
    %50 = arith.addf %47, %49 : vector<2x128xf32>
    %c0_50 = arith.constant 0 : index
    %c1_51 = arith.constant 1 : index
    %c0_52 = arith.constant 0 : index
    %c0_53 = arith.constant 0 : index
    %51 = vector.load %arg6[%c0_50, %c1_51, %c0_52, %c0_53] : memref<1x4x2x128xf32, #tpu.memory_space<vmem>>, vector<1x1x2x128xf32>
    %52 = vector.shape_cast %51 : vector<1x1x2x128xf32> to vector<2x128xf32>
    %53 = vector.shape_cast %50 : vector<2x128xf32> to vector<1x1x2x128xf32>
    tpu.vector_store %arg6[%c0_50, %c1_51, %c0_52, %c0_53], %53 {strides = array<i32>} : memref<1x4x2x128xf32, #tpu.memory_space<vmem>>, vector<1x1x2x128xf32>,
    %c0_54 = arith.constant 0 : index
    %c1_55 = arith.constant 1 : index
    %c0_56 = arith.constant 0 : index
    %c0_57 = arith.constant 0 : index
    %54 = vector.load %arg5[%c0_54, %c1_55, %c0_56, %c0_57] : memref<1x4x2x128xf32, #tpu.memory_space<vmem>>, vector<1x1x2x128xf32>
    %55 = vector.shape_cast %54 : vector<1x1x2x128xf32> to vector<2x128xf32>
    %56 = arith.addf %55, %34 : vector<2x128xf32>
    %c0_58 = arith.constant 0 : index
    %c1_59 = arith.constant 1 : index
    %c0_60 = arith.constant 0 : index
    %c0_61 = arith.constant 0 : index
    %57 = vector.load %arg5[%c0_58, %c1_59, %c0_60, %c0_61] : memref<1x4x2x128xf32, #tpu.memory_space<vmem>>, vector<1x1x2x128xf32>
    %58 = vector.shape_cast %57 : vector<1x1x2x128xf32> to vector<2x128xf32>
    %59 = vector.shape_cast %56 : vector<2x128xf32> to vector<1x1x2x128xf32>
    tpu.vector_store %arg5[%c0_58, %c1_59, %c0_60, %c0_61], %59 {strides = array<i32>} : memref<1x4x2x128xf32, #tpu.memory_space<vmem>>, vector<1x1x2x128xf32>,
    %c0_62 = arith.constant 0 : index
    %c2 = arith.constant 2 : index
    %c0_63 = arith.constant 0 : index
    %c0_64 = arith.constant 0 : index
    %60 = vector.load %arg2[%c0_62, %c2, %c0_63, %c0_64] : memref<1x4x2x128xf32, #tpu.memory_space<vmem>>, vector<1x1x2x128xf32>
    %61 = vector.shape_cast %60 : vector<1x1x2x128xf32> to vector<2x128xf32>
    %c2_i32 = arith.constant 2 : i32
    %62 = vector.broadcast %c2_i32 : i32 to vector<2x128xi32>
    %63 = arith.cmpi eq, %5, %62 : vector<2x128xi32>
    %c0_65 = arith.constant 0 : index
    %c2_66 = arith.constant 2 : index
    %c0_67 = arith.constant 0 : index
    %c0_68 = arith.constant 0 : index
    %64 = vector.load %arg4[%c0_65, %c2_66, %c0_67, %c0_68] : memref<1x4x2x128xf32, #tpu.memory_space<vmem>>, vector<1x1x2x128xf32>
    %65 = vector.shape_cast %64 : vector<1x1x2x128xf32> to vector<2x128xf32>
    %c0_i32_69 = arith.constant 0 : i32
    %66 = arith.sitofp %c0_i32_69 : i32 to f32
    %67 = vector.broadcast %66 : f32 to vector<2x128xf32>
    %68 = arith.select %63, %61, %67 : vector<2x128xi1>, vector<2x128xf32>
    %69 = arith.addf %65, %68 : vector<2x128xf32>
    %c0_70 = arith.constant 0 : index
    %c2_71 = arith.constant 2 : index
    %c0_72 = arith.constant 0 : index
    %c0_73 = arith.constant 0 : index
    %70 = vector.load %arg4[%c0_70, %c2_71, %c0_72, %c0_73] : memref<1x4x2x128xf32, #tpu.memory_space<vmem>>, vector<1x1x2x128xf32>
    %71 = vector.shape_cast %70 : vector<1x1x2x128xf32> to vector<2x128xf32>
    %72 = vector.shape_cast %69 : vector<2x128xf32> to vector<1x1x2x128xf32>
    tpu.vector_store %arg4[%c0_70, %c2_71, %c0_72, %c0_73], %72 {strides = array<i32>} : memref<1x4x2x128xf32, #tpu.memory_space<vmem>>, vector<1x1x2x128xf32>,
    %c0_74 = arith.constant 0 : index
    %c2_75 = arith.constant 2 : index
    %c0_76 = arith.constant 0 : index
    %c0_77 = arith.constant 0 : index
    %73 = vector.load %arg6[%c0_74, %c2_75, %c0_76, %c0_77] : memref<1x4x2x128xf32, #tpu.memory_space<vmem>>, vector<1x1x2x128xf32>
    %74 = vector.shape_cast %73 : vector<1x1x2x128xf32> to vector<2x128xf32>
    %75 = arith.extui %63 : vector<2x128xi1> to vector<2x128xi32>
    %76 = arith.sitofp %75 : vector<2x128xi32> to vector<2x128xf32>
    %77 = arith.addf %74, %76 : vector<2x128xf32>
    %c0_78 = arith.constant 0 : index
    %c2_79 = arith.constant 2 : index
    %c0_80 = arith.constant 0 : index
    %c0_81 = arith.constant 0 : index
    %78 = vector.load %arg6[%c0_78, %c2_79, %c0_80, %c0_81] : memref<1x4x2x128xf32, #tpu.memory_space<vmem>>, vector<1x1x2x128xf32>
    %79 = vector.shape_cast %78 : vector<1x1x2x128xf32> to vector<2x128xf32>
    %80 = vector.shape_cast %77 : vector<2x128xf32> to vector<1x1x2x128xf32>
    tpu.vector_store %arg6[%c0_78, %c2_79, %c0_80, %c0_81], %80 {strides = array<i32>} : memref<1x4x2x128xf32, #tpu.memory_space<vmem>>, vector<1x1x2x128xf32>,
    %c0_82 = arith.constant 0 : index
    %c2_83 = arith.constant 2 : index
    %c0_84 = arith.constant 0 : index
    %c0_85 = arith.constant 0 : index
    %81 = vector.load %arg5[%c0_82, %c2_83, %c0_84, %c0_85] : memref<1x4x2x128xf32, #tpu.memory_space<vmem>>, vector<1x1x2x128xf32>
    %82 = vector.shape_cast %81 : vector<1x1x2x128xf32> to vector<2x128xf32>
    %83 = arith.addf %82, %61 : vector<2x128xf32>
    %c0_86 = arith.constant 0 : index
    %c2_87 = arith.constant 2 : index
    %c0_88 = arith.constant 0 : index
    %c0_89 = arith.constant 0 : index
    %84 = vector.load %arg5[%c0_86, %c2_87, %c0_88, %c0_89] : memref<1x4x2x128xf32, #tpu.memory_space<vmem>>, vector<1x1x2x128xf32>
    %85 = vector.shape_cast %84 : vector<1x1x2x128xf32> to vector<2x128xf32>
    %86 = vector.shape_cast %83 : vector<2x128xf32> to vector<1x1x2x128xf32>
    tpu.vector_store %arg5[%c0_86, %c2_87, %c0_88, %c0_89], %86 {strides = array<i32>} : memref<1x4x2x128xf32, #tpu.memory_space<vmem>>, vector<1x1x2x128xf32>,
    %c0_90 = arith.constant 0 : index
    %c3 = arith.constant 3 : index
    %c0_91 = arith.constant 0 : index
    %c0_92 = arith.constant 0 : index
    %87 = vector.load %arg2[%c0_90, %c3, %c0_91, %c0_92] : memref<1x4x2x128xf32, #tpu.memory_space<vmem>>, vector<1x1x2x128xf32>
    %88 = vector.shape_cast %87 : vector<1x1x2x128xf32> to vector<2x128xf32>
    %c3_i32 = arith.constant 3 : i32
    %89 = vector.broadcast %c3_i32 : i32 to vector<2x128xi32>
    %90 = arith.cmpi eq, %5, %89 : vector<2x128xi32>
    %c0_93 = arith.constant 0 : index
    %c3_94 = arith.constant 3 : index
    %c0_95 = arith.constant 0 : index
    %c0_96 = arith.constant 0 : index
    %91 = vector.load %arg4[%c0_93, %c3_94, %c0_95, %c0_96] : memref<1x4x2x128xf32, #tpu.memory_space<vmem>>, vector<1x1x2x128xf32>
    %92 = vector.shape_cast %91 : vector<1x1x2x128xf32> to vector<2x128xf32>
    %c0_i32_97 = arith.constant 0 : i32
    %93 = arith.sitofp %c0_i32_97 : i32 to f32
    %94 = vector.broadcast %93 : f32 to vector<2x128xf32>
    %95 = arith.select %90, %88, %94 : vector<2x128xi1>, vector<2x128xf32>
    %96 = arith.addf %92, %95 : vector<2x128xf32>
    %c0_98 = arith.constant 0 : index
    %c3_99 = arith.constant 3 : index
    %c0_100 = arith.constant 0 : index
    %c0_101 = arith.constant 0 : index
    %97 = vector.load %arg4[%c0_98, %c3_99, %c0_100, %c0_101] : memref<1x4x2x128xf32, #tpu.memory_space<vmem>>, vector<1x1x2x128xf32>
    %98 = vector.shape_cast %97 : vector<1x1x2x128xf32> to vector<2x128xf32>
    %99 = vector.shape_cast %96 : vector<2x128xf32> to vector<1x1x2x128xf32>
    tpu.vector_store %arg4[%c0_98, %c3_99, %c0_100, %c0_101], %99 {strides = array<i32>} : memref<1x4x2x128xf32, #tpu.memory_space<vmem>>, vector<1x1x2x128xf32>,
    %c0_102 = arith.constant 0 : index
    %c3_103 = arith.constant 3 : index
    %c0_104 = arith.constant 0 : index
    %c0_105 = arith.constant 0 : index
    %100 = vector.load %arg6[%c0_102, %c3_103, %c0_104, %c0_105] : memref<1x4x2x128xf32, #tpu.memory_space<vmem>>, vector<1x1x2x128xf32>
    %101 = vector.shape_cast %100 : vector<1x1x2x128xf32> to vector<2x128xf32>
    %102 = arith.extui %90 : vector<2x128xi1> to vector<2x128xi32>
    %103 = arith.sitofp %102 : vector<2x128xi32> to vector<2x128xf32>
    %104 = arith.addf %101, %103 : vector<2x128xf32>
    %c0_106 = arith.constant 0 : index
    %c3_107 = arith.constant 3 : index
    %c0_108 = arith.constant 0 : index
    %c0_109 = arith.constant 0 : index
    %105 = vector.load %arg6[%c0_106, %c3_107, %c0_108, %c0_109] : memref<1x4x2x128xf32, #tpu.memory_space<vmem>>, vector<1x1x2x128xf32>
    %106 = vector.shape_cast %105 : vector<1x1x2x128xf32> to vector<2x128xf32>
    %107 = vector.shape_cast %104 : vector<2x128xf32> to vector<1x1x2x128xf32>
    tpu.vector_store %arg6[%c0_106, %c3_107, %c0_108, %c0_109], %107 {strides = array<i32>} : memref<1x4x2x128xf32, #tpu.memory_space<vmem>>, vector<1x1x2x128xf32>,
    %c0_110 = arith.constant 0 : index
    %c3_111 = arith.constant 3 : index
    %c0_112 = arith.constant 0 : index
    %c0_113 = arith.constant 0 : index
    %108 = vector.load %arg5[%c0_110, %c3_111, %c0_112, %c0_113] : memref<1x4x2x128xf32, #tpu.memory_space<vmem>>, vector<1x1x2x128xf32>
    %109 = vector.shape_cast %108 : vector<1x1x2x128xf32> to vector<2x128xf32>
    %110 = arith.addf %109, %88 : vector<2x128xf32>
    %c0_114 = arith.constant 0 : index
    %c3_115 = arith.constant 3 : index
    %c0_116 = arith.constant 0 : index
    %c0_117 = arith.constant 0 : index
    %111 = vector.load %arg5[%c0_114, %c3_115, %c0_116, %c0_117] : memref<1x4x2x128xf32, #tpu.memory_space<vmem>>, vector<1x1x2x128xf32>
    %112 = vector.shape_cast %111 : vector<1x1x2x128xf32> to vector<2x128xf32>
    %113 = vector.shape_cast %110 : vector<2x128xf32> to vector<1x1x2x128xf32>
    tpu.vector_store %arg5[%c0_114, %c3_115, %c0_116, %c0_117], %113 {strides = array<i32>} : memref<1x4x2x128xf32, #tpu.memory_space<vmem>>, vector<1x1x2x128xf32>,
    return
  }
  func.func @transform_0(%arg0: i32, %arg1: i32) -> (i32, i32, i32, i32) {
    %c0_i32 = arith.constant 0 : i32
    %c0_i32_0 = arith.constant 0 : i32
    %c0_i32_1 = arith.constant 0 : i32
    return %arg0, %c0_i32, %arg1, %c0_i32_0 : i32, i32, i32, i32
  }
  func.func @transform_1(%arg0: i32, %arg1: i32) -> (i32, i32, i32, i32) {
    %c0_i32 = arith.constant 0 : i32
    %c0_i32_0 = arith.constant 0 : i32
    %c0_i32_1 = arith.constant 0 : i32
    return %arg0, %c0_i32, %arg1, %c0_i32_0 : i32, i32, i32, i32
  }
  func.func @transform_2(%arg0: i32, %arg1: i32) -> (i32, i32, i32, i32) {
    %c0_i32 = arith.constant 0 : i32
    %c0_i32_0 = arith.constant 0 : i32
    %c0_i32_1 = arith.constant 0 : i32
    %c0_i32_2 = arith.constant 0 : i32
    return %arg0, %c0_i32, %c0_i32_0, %c0_i32_1 : i32, i32, i32, i32
  }
  func.func @transform_3(%arg0: i32, %arg1: i32) -> (i32, i32, i32, i32) {
    %c0_i32 = arith.constant 0 : i32
    %c0_i32_0 = arith.constant 0 : i32
    %c0_i32_1 = arith.constant 0 : i32
    %c0_i32_2 = arith.constant 0 : i32
    return %arg0, %c0_i32, %c0_i32_0, %c0_i32_1 : i32, i32, i32, i32
  }
  func.func @transform_4(%arg0: i32, %arg1: i32) -> (i32, i32, i32, i32) {
    %c0_i32 = arith.constant 0 : i32
    %c0_i32_0 = arith.constant 0 : i32
    %c0_i32_1 = arith.constant 0 : i32
    %c0_i32_2 = arith.constant 0 : i32
    return %arg0, %c0_i32, %c0_i32_0, %c0_i32_1 : i32, i32, i32, i32
  }
}

</mosaic_0001>

<bundles_post_ra>
// kernel: tpu_custom_call.1
= control target key start
LH: loop header
LB: loop body
LE: loop exit
PB: predicated region body
PF: predicated region fallthrough
CT: control target
= control target key end

     0   :  { %s1253_s0 = inlined_call_operand.hbm [shape: f32[2,4,2,128], index: 0, kind: input, shape index: {}]   ;;  %s1254_s1 = inlined_call_operand.hbm [shape: s8[2,1,2,128], index: 1, kind: input, shape index: {}]   ;;  %s1255_s2 = inlined_call_operand.hbm [shape: f32[2,4,2,128], index: 2, kind: output, shape index: {0}]   ;;  %s1256_s3 = inlined_call_operand.hbm [shape: f32[2,4,2,128], index: 3, kind: output, shape index: {1}]   ;;  %s1257_s4 = inlined_call_operand.hbm [shape: f32[2,4,2,128], index: 4, kind: output, shape index: {2}]  }
   0x1   :  { %1259 = sst [smem:[#allocation15_spill]] %s1253_s0 }
   0x2   :  { %10 = vsyncpa [#allocation3], 0 }
   0x3   :  { %12 = vsyncpa [#allocation3 + $0x1], 0 }
   0x4   :  { %13 = vsyncpa [#allocation6], 0 }
   0x5   :  { %15 = vsyncpa [#allocation6 + $0x1], 0 }
   0x6   :  { %16 = vsyncpa [#allocation4], 0 }
   0x7   :  { %18 = vsyncpa [#allocation4 + $0x1], 0 }
   0x8   :  { %19 = vsyncpa [#allocation9], 0 }
   0x9   :  { %21 = vsyncpa [#allocation9 + $0x1], 0  ;;  %s973_s15 = smov 0   ;;  %s975_s16 = smov 0  }
   0xa   :  { %s977_s17 = smov 0   ;;  %s979_s18 = smov 0  }
   0xb   :  { %s981_s19 = smov 0   ;;  %s983_s20 = smov 0  }
   0xc LB: > { %s1004_s21 = sadd.s32 4294967295, %s941_s20   ;;  %s1258_s22 = sadd.s32 4294967294, %s941_s20   ;;  %s941_s20 = sphi %s983_s20, %s27_s20   ;;  %s937_s19 = sphi %s981_s19, %s1271_s19   ;;  %s933_s18 = sphi %s979_s18, %s1270_s18   ;;  %s929_s17 = sphi %s977_s17, %s1269_s17   ;;  %s925_s16 = sphi %s975_s16, %s1268_s16   ;;  %s921_s15 = sphi %s973_s15, %s1267_s15  }
   0xd   : > { %s39_s23 = sadd.s32 1, %s937_s19  ;;  %s48_s24 = sadd.s32 1, %s929_s17 }
   0xe   : > { %p41_p0 = scmp.ge.s32.totalorder %s39_s23, 2  ;;  %p55_p1 = scmp.ne.s32.totalorder %s929_s17, %s925_s16 }
   0xf   : > { %p56_p2 = scmp.eq.s32.totalorder %s941_s20, 0  ;;  %p61_p3 = scmp.ne.s32.totalorder %s925_s16, %s921_s15 }
  0x10   : > { %s1273_s23 = smov (%p41_p0, %s39_s23), 0  ;;  %p62_p5 = scmp.eq.s32.totalorder %s1004_s21, 0 }
  0x11   : > { %p1016_p4 = por %p56_p2, %p55_p1  ;;  %s43_s26 = ssub.s32 %s937_s19, %s1273_s23 }
  0x12   : > { %p113_p6 = scmp.eq.s32.totalorder %s1004_s21, 1  ;;  %p46_p7 = scmp.eq.s32.totalorder %s43_s26, 0 }
  0x13   : > { %p1024_p8 = por %p62_p5, %p61_p3  ;;  %p119_p10 = scmp.eq.s32.totalorder %s1258_s22, 1 }
  0x14   : > { %p1028_p9 = por %p113_p6, %p55_p1  ;;  %p604_p12 = scmp.ge.s32.totalorder %s941_s20, 2 }
  0x15   : > { %s1035_s29 = scalar_select %p46_p7, %s929_s17, %s48_s24  }
  0x16   : > { %p1037_p11 = por %p119_p10, %p61_p3  ;;  %p680_p13 = scmp.lt.s32.totalorder %s941_s20, 2 }
  0x17   : > { %s191_s5 = sand.u32 1, %s929_s17   ;;  %s649_s7 = sshll.u32 %s937_s19, 3 }
  0x18   : > { %s605_s6 = sshll.u32 %s191_s5, 3  ;;  %s1264_s0 = sld [smem:[#allocation15_spill]] }
  0x19   : > { %s195_s11 = scalar_lea.vmem [#allocation2], %s605_s6  ;;  %p1050_p0 = pnand %p680_p13, %p1016_p4 }
  0x1a   : > { %s204_s12 = sshll.u32 %s195_s11, 4  ;;  %p608_p1 = scmp.ge.s32.totalorder %s941_s20, 1  ;;  %s205_s12 = int_to_ptr.vmem [resolvable:$true] %s204_s12 }
  0x1b   : > { %s192_s24 = scalar_lea.sflag [#allocation3], %s191_s5  ;;  %s943_s26 = smov 32  }
  0x1c   : > { %s944_s22 = smov 2   ;;  %p230_p2 = scmp.lt.s32.totalorder %s941_s20, 3 }
  0x1d   : > { %s221_s8 = scalar_lea.hbm %s1254_s1, %s937_s19  ;;  %s217_s25 = scalar_lea.vmem [#allocation5], %s191_s5 }
  0x1e   : > { %s201_s10 = scalar_lea.hbm %s1264_s0, %s649_s7  ;;  %p231_p3 = pnand %p608_p1, %p230_p2 }
  0x1f   : > { %s202_s13 = sshll.u32 %s201_s10, 4  ;;  %s223_s9 = sshll.u32 %s221_s8, 4  ;;  %s203_s13 = int_to_ptr.hbm [resolvable:$true] %s202_s13  ;;  %s224_s9 = int_to_ptr.hbm [resolvable:$true] %s223_s9 }
  0x20   : > { %666 = dma.hbm_to_vmem [thread:$0]  (!%p1050_p0), %s203_s13, 128, %s205_s12, %s192_s24, %s943_s26, %s943_s26, %s944_s22  }
  0x21   : > { %s225_s10 = sshll.u32 %s217_s25, 4  ;;  %s215_s11 = scalar_lea.sflag [#allocation6], %s191_s5  ;;  %s226_s10 = int_to_ptr.vmem [resolvable:$true] %s225_s10 }
  0x22   : > { %669 = dma.hbm_to_vmem [thread:$0]  (!%p1050_p0), %s224_s9, 16, %s226_s10, %s215_s11  }
  0x23   : > { %234 = sbr.rel (%p231_p3) target bundleno = 100 (0x64), region = 28  ;;  %s1065_s0 = sand.u32 (!%p231_p3), 1, %s925_s16  }
  0x24   : > { %s609_s22 = sshll.u32 (!%p231_p3), %s1065_s0, 3  ;;  %s237_s12 = scalar_lea.sflag (!%p231_p3), [#allocation3], %s1065_s0 }
  0x25   : > { %s240_s13 = scalar_lea.vmem (!%p231_p3), [#allocation2], %s609_s22 }
  0x28   : > { %904 = dma.done.wait (%p1024_p8), %s237_s12, 128  }
  0x29   : > { %906 = vsyncadd (%p1024_p8), %s237_s12, 4294967168  ;;  %s247_s5 = scalar_lea.sflag [#allocation6], %s1065_s0  ;;  %s249_s14 = scalar_lea.vmem [#allocation5], %s1065_s0 }
  0x2a   : > { %908 = dma.done.wait (%p1024_p8), %s247_s5, 16  }
  0x2b   : > { %910 = vsyncadd (%p1024_p8), %s247_s5, 4294967280  ;;  %s1079_s24 = scalar_lea.vmem [#allocation8], %s609_s22  ;;  %v945_v0 = vmov 0.0   ;;  %s1089_s27 = scalar_lea.vmem [#allocation7], %s609_s22  ;;  %v307_v1 = vld [vmem:[%s240_s13] sm:$0x3] }
  0x2c   : > { %297 = vst [vmem:[%s1079_s24] sm:$0x3] %v945_v0  ;;  %s380_s26 = sand.u32 1, %s1004_s21   ;;  %v614_v2 = vld [vmem:[%s240_s13 + $0x2] sm:$0x3]  ;;  %v622_v4 = vld [vmem:[%s240_s13 + $0x4] sm:$0x3] }
  0x2d   : > { %298 = vst [vmem:[%s1079_s24 + $0x2] sm:$0x3] %v945_v0  ;;  %s1101_s7 = scalar_lea.vmem [#allocation10], %s609_s22  ;;  %v630_v7 = vld [vmem:[%s240_s13 + $0x6] sm:$0x3]  ;;  %s1116_s6 = sshll.u32 %s933_s18, 3 }
  0x2e   : > { %299 = vst [vmem:[%s1079_s24 + $0x4] sm:$0x3] %v945_v0  ;;  %v305_v10 = vld [vmem:[%s249_s14] sm:$0x1]  ;;  %s415_s8 = sshll.u32 %s1079_s24, 4  ;;  %s414_s25 = scalar_lea.hbm %s1256_s3, %s1116_s6  ;;  %s1149_s8 = int_to_ptr.vmem [resolvable:$true] %s415_s8 }
  0x2f   : > { %300 = vst [vmem:[%s1079_s24 + $0x6] sm:$0x3] %v945_v0  ;;  %v306_v13 = vunpack.c.0.s8 %v305_v10  ;;  %s397_s22 = scalar_lea.hbm %s1255_s2, %s1116_s6  ;;  %s431_s5 = scalar_lea.hbm %s1257_s4, %s1116_s6 }
  0x30   : > { %293 = vst [vmem:[%s1089_s27] sm:$0x3] %v945_v0  ;;  %s1151_s14 = sshll.u32 %s414_s25, 4  ;;  %s1155_s18 = sshll.u32 %s397_s22, 4  ;;  %s418_s14 = int_to_ptr.hbm [resolvable:$true] %s1151_s14  ;;  %s401_s18 = int_to_ptr.hbm [resolvable:$true] %s1155_s18 }
  0x31   : > { %294 = vst [vmem:[%s1089_s27 + $0x2] sm:$0x3] %v945_v0  ;;  %vm308_vm0 = vcmp.eq.s32.totalorder %v306_v13, 0  ;;  %vm323_vm1 = vcmp.eq.s32.totalorder %v306_v13, 1  ;;  %vm341_vm2 = vcmp.eq.s32.totalorder %v306_v13, 2  ;;  %vm359_vm3 = vcmp.eq.s32.totalorder %v306_v13, 3 }
  0x32   : > { %295 = vst [vmem:[%s1089_s27 + $0x4] sm:$0x3] %v945_v0  ;;  %v310_v17 = vsel %vm308_vm0, %v307_v1, 0.0  ;;  %v613_v18 = vsel %vm308_vm0, 1.0, %v945_v0  ;;  %v326_v19 = vsel %vm323_vm1, %v614_v2, 0.0  ;;  %v618_v22 = vsel %vm323_vm1, 1.0, %v945_v0 }
  0x33   : > { %296 = vst [vmem:[%s1089_s27 + $0x6] sm:$0x3] %v945_v0  ;;  %v318_v3 = vld [vmem:[%s1079_s24] sm:$0x3]  ;;  %v344_v24 = vsel %vm341_vm2, %v622_v4, 0.0  ;;  %v626_v26 = vsel %vm341_vm2, 1.0, %v945_v0 }
  0x34   : > { %301 = vst [vmem:[%s1101_s7] sm:$0x3] %v945_v0  ;;  %v319_v5 = vadd.f32 %v318_v3, %v307_v1  ;;  %v620_v6 = vld [vmem:[%s1079_s24 + $0x2] sm:$0x3]  ;;  %v362_v31 = vsel %vm359_vm3, %v630_v7, 0.0  ;;  %v634_v34 = vsel %vm359_vm3, 1.0, %v945_v0  ;;  %s1158_s6 = sshll.u32 %s431_s5, 4  ;;  %s435_s6 = int_to_ptr.hbm [resolvable:$true] %s1158_s6 }
  0x35   : > { %302 = vst [vmem:[%s1101_s7 + $0x2] sm:$0x3] %v945_v0  ;;  %v337_v8 = vadd.f32 %v620_v6, %v614_v2  ;;  %v628_v9 = vld [vmem:[%s1079_s24 + $0x4] sm:$0x3]  ;;  %s432_s9 = sshll.u32 %s1101_s7, 4  ;;  %s1173_s25 = scalar_lea.sflag [#allocation9], %s380_s26  ;;  %s1168_s9 = int_to_ptr.vmem [resolvable:$true] %s432_s9 }
  0x36   : > { %303 = vst [vmem:[%s1101_s7 + $0x4] sm:$0x3] %v945_v0  ;;  %v355_v11 = vadd.f32 %v628_v9, %v622_v4  ;;  %v636_v12 = vld [vmem:[%s1079_s24 + $0x6] sm:$0x3]  ;;  %s809_s10 = sshra.s32 %s418_s14, 4  ;;  %s810_s10 = int_to_ptr.hbm [resolvable:$true] %s809_s10 }
  0x37   : > { %304 = vst [vmem:[%s1101_s7 + $0x6] sm:$0x3] %v945_v0  ;;  %v373_v14 = vadd.f32 %v636_v12, %v630_v7  ;;  %v309_v15 = vld [vmem:[%s1089_s27] sm:$0x3]  ;;  %s811_s11 = scalar_lea.hbm %s810_s10, 8  ;;  %p816_p7 = scmp.lt.s32.totalorder %s810_s10, %s1256_s3 }
  0x38   : > { %320 = vst [vmem:[%s1079_s24] sm:$0x3] %v319_v5  ;;  %v615_v16 = vld [vmem:[%s1089_s27 + $0x2] sm:$0x3]  ;;  %v311_v20 = vadd.f32 %v310_v17, %v309_v15  ;;  %p812_p4 = scmp.ne.s32.totalorder %s810_s10, %s811_s11 }
  0x39   : > { %621 = vst [vmem:[%s1079_s24 + $0x2] sm:$0x3] %v337_v8  ;;  %v327_v21 = vadd.f32 %v615_v16, %v326_v19  ;;  %v623_v23 = vld [vmem:[%s1089_s27 + $0x4] sm:$0x3] }
  0x3a   : > { %629 = vst [vmem:[%s1079_s24 + $0x4] sm:$0x3] %v355_v11  ;;  %v345_v29 = vadd.f32 %v623_v23, %v344_v24  ;;  %v631_v30 = vld [vmem:[%s1089_s27 + $0x6] sm:$0x3]  ;;  %p813_p5 = pnand %p812_p4, %p1028_p9 }
  0x3b   : > { %637 = vst [vmem:[%s1079_s24 + $0x6] sm:$0x3] %v373_v14  ;;  %v313_v25 = vld [vmem:[%s1101_s7] sm:$0x3]  ;;  %v363_v36 = vadd.f32 %v631_v30, %v362_v31  ;;  %s398_s24 = sshll.u32 %s1089_s27, 4  ;;  %s1164_s24 = int_to_ptr.vmem [resolvable:$true] %s398_s24 }
  0x3c   : > { %312 = vst [vmem:[%s1089_s27] sm:$0x3] %v311_v20  ;;  %v316_v27 = vadd.f32 %v613_v18, %v313_v25  ;;  %v617_v28 = vld [vmem:[%s1101_s7 + $0x2] sm:$0x3]  ;;  %p814_p6 = pneg %p813_p5 }
  0x3d   : > { %616 = vst [vmem:[%s1089_s27 + $0x2] sm:$0x3] %v327_v21  ;;  %v333_v32 = vadd.f32 %v618_v22, %v617_v28  ;;  %v625_v33 = vld [vmem:[%s1101_s7 + $0x4] sm:$0x3] }
  0x3e   : > { %317 = vst [vmem:[%s1101_s7] sm:$0x3] %v316_v27  ;;  %v351_v35 = vadd.f32 %v626_v26, %v625_v33  ;;  %v633_v37 = vld [vmem:[%s1101_s7 + $0x6] sm:$0x3] }
  0x3f   : > { %619 = vst [vmem:[%s1101_s7 + $0x2] sm:$0x3] %v333_v32  ;;  %v369_v38 = vadd.f32 %v634_v34, %v633_v37 }
  0x40   : > { %624 = vst [vmem:[%s1089_s27 + $0x4] sm:$0x3] %v345_v29 }
  0x41   : > { %627 = vst [vmem:[%s1101_s7 + $0x4] sm:$0x3] %v351_v35 }
  0x42   : > { %632 = vst [vmem:[%s1089_s27 + $0x6] sm:$0x3] %v363_v36  ;;  %s815_s27 = scalar_lea.hbm %s1256_s3, 16 }
  0x43   : > { %635 = vst [vmem:[%s1101_s7 + $0x6] sm:$0x3] %v369_v38  ;;  %p817_p8 = scmp.lt.s32.totalorder %s815_s27, %s811_s11 }
  0x45   : > { %p818_p10 = por %p817_p8, %p816_p7 }
  0x47   : > { %p819_p13 = pnand %p818_p10, %p814_p6 }
  0x49   : > { %822 = shalt.err (!%p819_p13)
}
  0x4a   : > { %s946_s21 = smov 32   ;;  %s947_s26 = smov 2  }
  0x4b   : > { %658 = dma.vmem_to_hbm [thread:$0]  (%p1028_p9), %s1149_s8, 128, %s418_s14, %s1173_s25, %s946_s21, %s946_s21, %s947_s26  }
  0x4c   : > { %s376_s7 = scalar_lea.sflag [#allocation4], %s1065_s0  ;;  %s837_s10 = sshra.s32 %s401_s18, 4  ;;  %s838_s10 = int_to_ptr.hbm [resolvable:$true] %s837_s10 }
  0x4d   : > { %s839_s11 = scalar_lea.hbm %s838_s10, 8  ;;  %s843_s27 = scalar_lea.hbm %s1255_s2, 16 }
  0x4e   : > { %p840_p0 = scmp.ne.s32.totalorder %s838_s10, %s839_s11  ;;  %p844_p3 = scmp.lt.s32.totalorder %s838_s10, %s1255_s2 }
  0x4f   : > { %p845_p4 = scmp.lt.s32.totalorder %s843_s27, %s839_s11 }
  0x50   : > { %p841_p1 = pnand %p840_p0, %p1028_p9 }
  0x51   : > { %p846_p5 = por %p845_p4, %p844_p3 }
  0x52   : > { %p842_p2 = pneg %p841_p1 }
  0x54   : > { %p847_p6 = pnand %p846_p5, %p842_p2 }
  0x56   : > { %850 = shalt.err (!%p847_p6)
}
  0x57   : > { %657 = dma.vmem_to_hbm [thread:$0]  (%p1028_p9), %s1164_s24, 128, %s401_s18, %s376_s7, %s946_s21, %s946_s21, %s947_s26  }
  0x58   : > { %s865_s0 = sshra.s32 %s435_s6, 4  ;;  %s871_s11 = scalar_lea.hbm %s1257_s4, 16  ;;  %s866_s0 = int_to_ptr.hbm [resolvable:$true] %s865_s0 }
  0x59   : > { %s867_s8 = scalar_lea.hbm %s866_s0, 8  ;;  %p872_p13 = scmp.lt.s32.totalorder %s866_s0, %s1257_s4 }
  0x5a   : > { %p868_p7 = scmp.ne.s32.totalorder %s866_s0, %s867_s8  ;;  %p873_p0 = scmp.lt.s32.totalorder %s871_s11, %s867_s8 }
  0x5c   : > { %p869_p8 = pnand %p868_p7, %p1028_p9  ;;  %p874_p1 = por %p873_p0, %p872_p13 }
  0x5e   : > { %p870_p10 = pneg %p869_p8 }
  0x60   : > { %p875_p2 = pnand %p874_p1, %p870_p10 }
  0x62   : > { %878 = shalt.err (!%p875_p2)
}
  0x63   : > { %659 = dma.vmem_to_hbm [thread:$0]  (%p1028_p9), %s1168_s9, 128, %s435_s6, %s1173_s25, %s946_s21, %s946_s21, %s947_s26  }
  0x64 PF: > { %s449_s24 = sand.u32 1, %s921_s15   ;;  %p671_p3 = pnand %p604_p12, %p1037_p11 }
  0x65   : > { %s450_s18 = scalar_lea.sflag [#allocation4], %s449_s24 }
  0x66   : > { %p672_p4 = pneg %p671_p3 }
  0x68   : > { %912 = dma.done.wait (%p672_p4), %s450_s18, 128  }
  0x69   : > { %914 = vsyncadd (%p672_p4), %s450_s18, 4294967168  ;;  %s1266_s28 = sadd.s32 4294967294, %s941_s20  }
  0x6a   : > { %s459_s7 = sand.u32 1, %s1266_s28  }
  0x6b   : > { %s460_s27 = scalar_lea.sflag [#allocation9], %s459_s7 }
  0x6c   : > { %916 = dma.done.wait (%p672_p4), %s460_s27, 256  }
  0x6d   : > { %918 = vsyncadd (%p672_p4), %s460_s27, 4294967040  ;;  %s27_s20 = sadd.s32 1, %s941_s20   ;;  %s1267_s15 = smov %s925_s16 }
  0x6e   : > { %p24_p9 = scmp.ge.s32.totalorder %s27_s20, 4   ;;  %s1268_s16 = smov %s929_s17 }
  0x6f   : > { %s1269_s17 = smov %s1035_s29  ;;  %s1270_s18 = smov %s937_s19 }
  0x70   : > { %s1271_s19 = smov %s1273_s23  ;;  %26 = sbr.rel (!%p24_p9) target bundleno = 12 (0xc), region = 134 }
  0x75   :  { %476 = vsyncpa [#allocation3], 1 }
  0x76   :  { %478 = vsyncpa [#allocation3 + $0x1], 1 }
  0x77   :  { %479 = vsyncpa [#allocation6], 1 }
  0x78   :  { %481 = vsyncpa [#allocation6 + $0x1], 1 }
  0x79   :  { %482 = vsyncpa [#allocation4], 1 }
  0x7a   :  { %484 = vsyncpa [#allocation4 + $0x1], 1 }
  0x7b   :  { %485 = vsyncpa [#allocation9], 1 }
  0x7c   :  { %487 = vsyncpa [#allocation9 + $0x1], 1 }

</bundles_post_ra>
